<compile_context>
chip_gen: v6e
topology: v6e:2x2x1
jax: 0.10.0
libtpu: 0.0.40
codegen_flags: <defaults>
</compile_context>

<pallas_src>
import jax
import jax.numpy as jnp
from jax.experimental import pallas as pl
from jax.experimental.pallas import tpu as pltpu

EPS = 1e-5  # nn.BatchNorm1d default


def _round_up(v, m):
    return (v + m - 1) // m * m


def _bn_relu(y, gamma, beta):
    """Train-mode BatchNorm1d (biased batch variance) + ReLU, all in f32.

    Two-pass (centered) variance to avoid E[y^2]-E[y]^2 cancellation; rsqrt on the EUP.
    Padded feature columns (zero weight, gamma=beta=0) stay exactly 0 through this.
    """
    inv_n = 1.0 / y.shape[0]
    mean = jnp.sum(y, axis=0, keepdims=True) * inv_n
    yc = y - mean
    var = jnp.sum(yc * yc, axis=0, keepdims=True) * inv_n
    inv_std = jax.lax.rsqrt(var + EPS)  # EUP slot
    return jnp.maximum(yc * (inv_std * gamma) + beta, 0.0)


# ----------------------------------------------------------------------------
# Kernels
# ----------------------------------------------------------------------------
def linear_unit_kernel(x_ref, w_ref, gb_ref, o_ref):
    # Single resident block per Dout tile: y = x @ W^T slice, BN+ReLU epilogue, written
    # straight to o_ref (no K axis, no accumulator scratch -- Din fits one block).
    y = jnp.dot(x_ref[...], w_ref[...], preferred_element_type=jnp.float32)
    o_ref[...] = _bn_relu(y, gb_ref[0:1, :], gb_ref[1:2, :]).astype(o_ref.dtype)


def fused_encode_decode_kernel(x_ref, ws_ref, gbs_ref, wd_ref, gbd_ref,
                               wdec_ref, gbdec_ref, o_ref):
    # s = LU_s(x); d = LU_d(x); out_tile = LU_dec(s + d)[:, tile]
    # All intermediates live in VMEM/vregs; only the final tile is stored to HBM.
    x = x_ref[...]
    s = _bn_relu(jnp.dot(x, ws_ref[...], preferred_element_type=jnp.float32),
                 gbs_ref[0:1, :], gbs_ref[1:2, :])
    d = _bn_relu(jnp.dot(x, wd_ref[...], preferred_element_type=jnp.float32),
                 gbd_ref[0:1, :], gbd_ref[1:2, :])
    g = s + d
    y = jnp.dot(g.astype(wdec_ref.dtype), wdec_ref[...],
                preferred_element_type=jnp.float32)
    o_ref[...] = _bn_relu(y, gbdec_ref[0:1, :], gbdec_ref[1:2, :]).astype(o_ref.dtype)


# ----------------------------------------------------------------------------
# One-time parameter preprocessing (hoisted out of the per-call hot path)
# ----------------------------------------------------------------------------
def prepare_linear_unit_params(weight, gamma, beta, *, d_out_pad=None):
    """weight: [Dout, Din] -> pre-transposed, lane-padded W^T [Din, Dout_p];
    gamma/beta packed into one (2, Dout_p) block (one DMA stream).
    The nn.Linear bias is dropped: it cancels exactly under train-mode BatchNorm."""
    d_out, d_in = weight.shape
    d_out_p = d_out_pad if d_out_pad is not None else _round_up(d_out, 128)
    assert d_out_p >= d_out
    w_t = jnp.zeros((d_in, d_out_p), jnp.float32).at[:, :d_out].set(weight.T)
    gb = jnp.zeros((2, d_out_p), jnp.float32)
    gb = gb.at[0, :d_out].set(gamma).at[1, :d_out].set(beta)
    return w_t, gb, d_out


def _pick_tn(d_out_p):
    # tn=128 whenever there is more than one lane-tile so the "parallel" grid axis gets
    # >= 2 steps (lights up both v7x TensorCores); harmless (sequential) on v5e/v6e.
    return 128 if d_out_p > 128 else d_out_p


# ----------------------------------------------------------------------------
# Wrappers
# ----------------------------------------------------------------------------
def linear_unit(x, w_t, gb, d_out, *, tn=None):
    """One LinearUnit: x [N, Din] -> ReLU(BN(x @ W^T)) [N, Dout] (f32).

    Full batch stays resident so train-mode batch statistics are exact.
    For very large N or Din, reintroduce batch/K tiling (with two-pass BN stats)."""
    n, d_in = x.shape
    d_out_p = w_t.shape[1]
    tn = tn or _pick_tn(d_out_p)
    assert d_out_p % tn == 0
    grid = (d_out_p // tn,)

    resident = 4 * (n * d_in + d_in * tn + 2 * tn + n * tn)
    assert 2 * resident < 32 * 1024 * 1024, "tiles too large for VMEM; re-tile for this N"

    cost = pl.CostEstimate(
        flops=2 * n * d_in * d_out_p,
        transcendentals=d_out_p,
        bytes_accessed=4 * (n * d_in + d_in * d_out_p + 2 * d_out_p + n * d_out_p),
    )

    out = pl.pallas_call(
        linear_unit_kernel,
        out_shape=jax.ShapeDtypeStruct((n, d_out_p), jnp.float32),
        grid_spec=pltpu.PrefetchScalarGridSpec(
            num_scalar_prefetch=0,
            grid=grid,
            in_specs=[
                pl.BlockSpec((n, d_in), lambda j: (0, 0)),    # x: fully resident
                pl.BlockSpec((d_in, tn), lambda j: (0, j)),   # W^T slice for this Dout tile
                pl.BlockSpec((2, tn), lambda j: (0, j)),      # gamma/beta slice
            ],
            out_specs=pl.BlockSpec((n, tn), lambda j: (0, j)),
        ),
        compiler_params=pltpu.CompilerParams(
            dimension_semantics=("parallel",),
            vmem_limit_bytes=32 * 1024 * 1024,
        ),
        cost_estimate=cost,
    )(x, w_t, gb)
    return out[:, :d_out]


def fused_encoder_decoder(x, enc_s, enc_d, dec, *, tn=None):
    """out = LinearUnit_dec(LinearUnit_s(x) + LinearUnit_d(x)) in a single pallas_call.

    The (N, hidden) intermediates never leave VMEM: one launch, one activation store."""
    ws, gbs, _ = enc_s
    wd, gbd, _ = enc_d
    wdec, gbdec, d_out = dec
    n, d_in = x.shape
    h = ws.shape[1]
    d_out_p = wdec.shape[1]
    assert wd.shape == ws.shape and wdec.shape[0] == h
    tn = tn or _pick_tn(d_out_p)
    assert d_out_p % tn == 0
    grid = (d_out_p // tn,)

    resident = 4 * (n * d_in + 2 * d_in * h + 4 * h + h * tn + 2 * tn + n * tn)
    assert 2 * resident < 32 * 1024 * 1024, "tiles too large for VMEM; re-tile for this N"

    cost = pl.CostEstimate(
        flops=2 * n * (2 * d_in * h + h * d_out_p),
        transcendentals=2 * h + d_out_p,
        bytes_accessed=4 * (n * d_in + 2 * d_in * h + 4 * h
                            + h * d_out_p + 2 * d_out_p + n * d_out_p),
    )

    out = pl.pallas_call(
        fused_encode_decode_kernel,
        out_shape=jax.ShapeDtypeStruct((n, d_out_p), jnp.float32),
        grid_spec=pltpu.PrefetchScalarGridSpec(
            num_scalar_prefetch=0,
            grid=grid,
            in_specs=[
                pl.BlockSpec((n, d_in), lambda j: (0, 0)),    # x: fully resident
                pl.BlockSpec((d_in, h), lambda j: (0, 0)),    # encoder_s W^T
                pl.BlockSpec((2, h), lambda j: (0, 0)),       # encoder_s gamma/beta
                pl.BlockSpec((d_in, h), lambda j: (0, 0)),    # encoder_d W^T
                pl.BlockSpec((2, h), lambda j: (0, 0)),       # encoder_d gamma/beta
                pl.BlockSpec((h, tn), lambda j: (0, j)),      # decoder W^T, Dout tile
                pl.BlockSpec((2, tn), lambda j: (0, j)),      # decoder gamma/beta tile
            ],
            out_specs=pl.BlockSpec((n, tn), lambda j: (0, j)),
        ),
        compiler_params=pltpu.CompilerParams(
            dimension_semantics=("parallel",),
            vmem_limit_bytes=32 * 1024 * 1024,
        ),
        cost_estimate=cost,
    )(x, ws, gbs, wd, gbd, wdec, gbdec)
    return out[:, :d_out]


# ----------------------------------------------------------------------------
# Pure-JAX references (match PyTorch train-mode Linear -> BatchNorm1d -> ReLU)
# ----------------------------------------------------------------------------
def linear_unit_ref(x, weight, bias, gamma, beta):
    y = x @ weight.T + bias
    mean = jnp.mean(y, axis=0, keepdims=True)
    var = jnp.mean((y - mean) ** 2, axis=0, keepdims=True)
    return jnp.maximum((y - mean) / jnp.sqrt(var + EPS) * gamma + beta, 0.0)


def fused_ref(x, p_s, p_d, p_dec):
    s = linear_unit_ref(x, *p_s)
    d = linear_unit_ref(x, *p_d)
    return linear_unit_ref(s + d, *p_dec)


def _make_params(key, d_in, d_out):
    kw, kb, kg, kbeta = jax.random.split(key, 4)
    bound = 1.0 / (d_in ** 0.5)
    weight = jax.random.uniform(kw, (d_out, d_in), jnp.float32, -bound, bound)
    bias = jax.random.uniform(kb, (d_out,), jnp.float32, -bound, bound)
    gamma = 1.0 + 0.1 * jax.random.normal(kg, (d_out,), jnp.float32)
    beta = 0.1 * jax.random.normal(kbeta, (d_out,), jnp.float32)
    return weight, bias, gamma, beta


if __name__ == "__main__":
    key = jax.random.PRNGKey(0)
    # my_model shapes: encoder_s/encoder_d = LinearUnit(64, 64), decoder = LinearUnit(64, 200).
    N, D_IN, HID, D_OUT = 8, 64, 64, 200

    key, kx, ks, kd, kdec = jax.random.split(key, 5)
    x = jax.random.normal(kx, (N, D_IN), jnp.float32)
    p_s = _make_params(ks, D_IN, HID)
    p_d = _make_params(kd, D_IN, HID)
    p_dec = _make_params(kdec, HID, D_OUT)

    # One-time parameter preprocessing (hoisted out of the hot path).
    enc_s = prepare_linear_unit_params(p_s[0], p_s[2], p_s[3], d_out_pad=HID)
    enc_d = prepare_linear_unit_params(p_d[0], p_d[2], p_d[3], d_out_pad=HID)
    dec = prepare_linear_unit_params(p_dec[0], p_dec[2], p_dec[3])  # 200 -> 256 lane pad

    # Fused encoder_s + encoder_d + add + decoder (single pallas_call).
    out_fused = jax.block_until_ready(fused_encoder_decoder(x, enc_s, enc_d, dec))
    ref_fused = fused_ref(x, p_s, p_d, p_dec)
    assert out_fused.shape == (N, D_OUT)
    assert jnp.allclose(out_fused, ref_fused, atol=2e-3, rtol=2e-3), "fused kernel mismatch"

    # Standalone LinearUnit kernel (building block, e.g. for the decoder on its own).
    out_lu = jax.block_until_ready(linear_unit(x, *dec))
    ref_lu = linear_unit_ref(x, *p_dec)
    assert out_lu.shape == (N, D_OUT)
    assert jnp.allclose(out_lu, ref_lu, atol=2e-3, rtol=2e-3), "linear_unit kernel mismatch"

    print("KERNEL_OK")
</pallas_src>

<mosaic_0001>
module attributes {stable_mosaic.version = 11 : i64} {
  func.func @fused_encode_decode_kernel(%arg0: i32, %arg1: memref<8x64xf32, #tpu.memory_space<vmem>>, %arg2: memref<64x64xf32, #tpu.memory_space<vmem>>, %arg3: memref<2x64xf32, #tpu.memory_space<vmem>>, %arg4: memref<64x64xf32, #tpu.memory_space<vmem>>, %arg5: memref<2x64xf32, #tpu.memory_space<vmem>>, %arg6: memref<64x128xf32, #tpu.memory_space<vmem>>, %arg7: memref<2x128xf32, #tpu.memory_space<vmem>>, %arg8: memref<8x128xf32, #tpu.memory_space<vmem>>) attributes {dimension_semantics = [#tpu.dimension_semantics<parallel>], iteration_bounds = array<i64: 2>, scalar_prefetch = 0 : i64, scratch_operands = 0 : i64, tpu.core_type = #tpu.core_type<tc>, window_params = [{pipeline_mode = #tpu.pipeline_mode<synchronous>, transform_indices = @transform_0, window_bounds = array<i64: 8, 64>}, {pipeline_mode = #tpu.pipeline_mode<synchronous>, transform_indices = @transform_1, window_bounds = array<i64: 64, 64>}, {pipeline_mode = #tpu.pipeline_mode<synchronous>, transform_indices = @transform_2, window_bounds = array<i64: 2, 64>}, {pipeline_mode = #tpu.pipeline_mode<synchronous>, transform_indices = @transform_3, window_bounds = array<i64: 64, 64>}, {pipeline_mode = #tpu.pipeline_mode<synchronous>, transform_indices = @transform_4, window_bounds = array<i64: 2, 64>}, {transform_indices = @transform_5, window_bounds = array<i64: 64, 128>}, {transform_indices = @transform_6, window_bounds = array<i64: 2, 128>}, {transform_indices = @transform_7, window_bounds = array<i64: 8, 128>}]} {
    %c0 = arith.constant 0 : index
    %c0_0 = arith.constant 0 : index
    %0 = vector.load %arg1[%c0, %c0_0] : memref<8x64xf32, #tpu.memory_space<vmem>>, vector<8x64xf32>
    %c0_1 = arith.constant 0 : index
    %c0_2 = arith.constant 0 : index
    %1 = vector.load %arg2[%c0_1, %c0_2] : memref<64x64xf32, #tpu.memory_space<vmem>>, vector<64x64xf32>
    %cst = arith.constant dense<0.000000e+00> : vector<8x64xf32>
    %2 = tpu.matmul %0, %1, %cst {dimension_numbers = #tpu.dot_dimension_numbers<[1], [0], [0], [1], [0, 0, 1, 1], [], []>} : vector<8x64xf32>, vector<64x64xf32>, vector<8x64xf32> -> vector<8x64xf32>
    %c0_3 = arith.constant 0 : index
    %c0_4 = arith.constant 0 : index
    %3 = vector.load %arg3[%c0_3, %c0_4] : memref<2x64xf32, #tpu.memory_space<vmem>>, vector<1x64xf32>
    %c1 = arith.constant 1 : index
    %c0_5 = arith.constant 0 : index
    %4 = vector.load %arg3[%c1, %c0_5] : memref<2x64xf32, #tpu.memory_space<vmem>>, vector<1x64xf32>
    %cst_6 = arith.constant dense<0.000000e+00> : vector<64xf32>
    %5 = vector.multi_reduction <add>, %2, %cst_6 [0] : vector<8x64xf32> to vector<64xf32>
    %6 = vector.shape_cast %5 : vector<64xf32> to vector<1x64xf32>
    %cst_7 = arith.constant 1.250000e-01 : f32
    %7 = vector.broadcast %cst_7 : f32 to vector<1x64xf32>
    %8 = arith.mulf %6, %7 : vector<1x64xf32>
    %9 = vector.broadcast %8 : vector<1x64xf32> to vector<8x64xf32>
    %10 = arith.subf %2, %9 : vector<8x64xf32>
    %11 = arith.mulf %10, %10 : vector<8x64xf32>
    %cst_8 = arith.constant dense<0.000000e+00> : vector<64xf32>
    %12 = vector.multi_reduction <add>, %11, %cst_8 [0] : vector<8x64xf32> to vector<64xf32>
    %13 = vector.shape_cast %12 : vector<64xf32> to vector<1x64xf32>
    %cst_9 = arith.constant 1.250000e-01 : f32
    %14 = vector.broadcast %cst_9 : f32 to vector<1x64xf32>
    %15 = arith.mulf %13, %14 : vector<1x64xf32>
    %cst_10 = arith.constant 9.99999974E-6 : f32
    %16 = vector.broadcast %cst_10 : f32 to vector<1x64xf32>
    %17 = arith.addf %15, %16 : vector<1x64xf32>
    %18 = math.rsqrt %17 : vector<1x64xf32>
    %19 = arith.mulf %18, %3 : vector<1x64xf32>
    %20 = vector.broadcast %19 : vector<1x64xf32> to vector<8x64xf32>
    %21 = arith.mulf %10, %20 : vector<8x64xf32>
    %22 = vector.broadcast %4 : vector<1x64xf32> to vector<8x64xf32>
    %23 = arith.addf %21, %22 : vector<8x64xf32>
    %cst_11 = arith.constant 0.000000e+00 : f32
    %24 = vector.broadcast %cst_11 : f32 to vector<8x64xf32>
    %25 = arith.maximumf %23, %24 : vector<8x64xf32>
    %c0_12 = arith.constant 0 : index
    %c0_13 = arith.constant 0 : index
    %26 = vector.load %arg4[%c0_12, %c0_13] : memref<64x64xf32, #tpu.memory_space<vmem>>, vector<64x64xf32>
    %cst_14 = arith.constant dense<0.000000e+00> : vector<8x64xf32>
    %27 = tpu.matmul %0, %26, %cst_14 {dimension_numbers = #tpu.dot_dimension_numbers<[1], [0], [0], [1], [0, 0, 1, 1], [], []>} : vector<8x64xf32>, vector<64x64xf32>, vector<8x64xf32> -> vector<8x64xf32>
    %c0_15 = arith.constant 0 : index
    %c0_16 = arith.constant 0 : index
    %28 = vector.load %arg5[%c0_15, %c0_16] : memref<2x64xf32, #tpu.memory_space<vmem>>, vector<1x64xf32>
    %c1_17 = arith.constant 1 : index
    %c0_18 = arith.constant 0 : index
    %29 = vector.load %arg5[%c1_17, %c0_18] : memref<2x64xf32, #tpu.memory_space<vmem>>, vector<1x64xf32>
    %cst_19 = arith.constant dense<0.000000e+00> : vector<64xf32>
    %30 = vector.multi_reduction <add>, %27, %cst_19 [0] : vector<8x64xf32> to vector<64xf32>
    %31 = vector.shape_cast %30 : vector<64xf32> to vector<1x64xf32>
    %cst_20 = arith.constant 1.250000e-01 : f32
    %32 = vector.broadcast %cst_20 : f32 to vector<1x64xf32>
    %33 = arith.mulf %31, %32 : vector<1x64xf32>
    %34 = vector.broadcast %33 : vector<1x64xf32> to vector<8x64xf32>
    %35 = arith.subf %27, %34 : vector<8x64xf32>
    %36 = arith.mulf %35, %35 : vector<8x64xf32>
    %cst_21 = arith.constant dense<0.000000e+00> : vector<64xf32>
    %37 = vector.multi_reduction <add>, %36, %cst_21 [0] : vector<8x64xf32> to vector<64xf32>
    %38 = vector.shape_cast %37 : vector<64xf32> to vector<1x64xf32>
    %cst_22 = arith.constant 1.250000e-01 : f32
    %39 = vector.broadcast %cst_22 : f32 to vector<1x64xf32>
    %40 = arith.mulf %38, %39 : vector<1x64xf32>
    %cst_23 = arith.constant 9.99999974E-6 : f32
    %41 = vector.broadcast %cst_23 : f32 to vector<1x64xf32>
    %42 = arith.addf %40, %41 : vector<1x64xf32>
    %43 = math.rsqrt %42 : vector<1x64xf32>
    %44 = arith.mulf %43, %28 : vector<1x64xf32>
    %45 = vector.broadcast %44 : vector<1x64xf32> to vector<8x64xf32>
    %46 = arith.mulf %35, %45 : vector<8x64xf32>
    %47 = vector.broadcast %29 : vector<1x64xf32> to vector<8x64xf32>
    %48 = arith.addf %46, %47 : vector<8x64xf32>
    %cst_24 = arith.constant 0.000000e+00 : f32
    %49 = vector.broadcast %cst_24 : f32 to vector<8x64xf32>
    %50 = arith.maximumf %48, %49 : vector<8x64xf32>
    %51 = arith.addf %25, %50 : vector<8x64xf32>
    %c0_25 = arith.constant 0 : index
    %c0_26 = arith.constant 0 : index
    %52 = vector.load %arg6[%c0_25, %c0_26] : memref<64x128xf32, #tpu.memory_space<vmem>>, vector<64x128xf32>
    %cst_27 = arith.constant dense<0.000000e+00> : vector<8x128xf32>
    %53 = tpu.matmul %51, %52, %cst_27 {dimension_numbers = #tpu.dot_dimension_numbers<[1], [0], [0], [1], [0, 0, 1, 1], [], []>} : vector<8x64xf32>, vector<64x128xf32>, vector<8x128xf32> -> vector<8x128xf32>
    %c0_28 = arith.constant 0 : index
    %c0_29 = arith.constant 0 : index
    %54 = vector.load %arg7[%c0_28, %c0_29] : memref<2x128xf32, #tpu.memory_space<vmem>>, vector<1x128xf32>
    %c1_30 = arith.constant 1 : index
    %c0_31 = arith.constant 0 : index
    %55 = vector.load %arg7[%c1_30, %c0_31] : memref<2x128xf32, #tpu.memory_space<vmem>>, vector<1x128xf32>
    %cst_32 = arith.constant dense<0.000000e+00> : vector<128xf32>
    %56 = vector.multi_reduction <add>, %53, %cst_32 [0] : vector<8x128xf32> to vector<128xf32>
    %57 = vector.shape_cast %56 : vector<128xf32> to vector<1x128xf32>
    %cst_33 = arith.constant 1.250000e-01 : f32
    %58 = vector.broadcast %cst_33 : f32 to vector<1x128xf32>
    %59 = arith.mulf %57, %58 : vector<1x128xf32>
    %60 = vector.broadcast %59 : vector<1x128xf32> to vector<8x128xf32>
    %61 = arith.subf %53, %60 : vector<8x128xf32>
    %62 = arith.mulf %61, %61 : vector<8x128xf32>
    %cst_34 = arith.constant dense<0.000000e+00> : vector<128xf32>
    %63 = vector.multi_reduction <add>, %62, %cst_34 [0] : vector<8x128xf32> to vector<128xf32>
    %64 = vector.shape_cast %63 : vector<128xf32> to vector<1x128xf32>
    %cst_35 = arith.constant 1.250000e-01 : f32
    %65 = vector.broadcast %cst_35 : f32 to vector<1x128xf32>
    %66 = arith.mulf %64, %65 : vector<1x128xf32>
    %cst_36 = arith.constant 9.99999974E-6 : f32
    %67 = vector.broadcast %cst_36 : f32 to vector<1x128xf32>
    %68 = arith.addf %66, %67 : vector<1x128xf32>
    %69 = math.rsqrt %68 : vector<1x128xf32>
    %70 = arith.mulf %69, %54 : vector<1x128xf32>
    %71 = vector.broadcast %70 : vector<1x128xf32> to vector<8x128xf32>
    %72 = arith.mulf %61, %71 : vector<8x128xf32>
    %73 = vector.broadcast %55 : vector<1x128xf32> to vector<8x128xf32>
    %74 = arith.addf %72, %73 : vector<8x128xf32>
    %cst_37 = arith.constant 0.000000e+00 : f32
    %75 = vector.broadcast %cst_37 : f32 to vector<8x128xf32>
    %76 = arith.maximumf %74, %75 : vector<8x128xf32>
    %c0_38 = arith.constant 0 : index
    %c0_39 = arith.constant 0 : index
    %77 = vector.load %arg8[%c0_38, %c0_39] : memref<8x128xf32, #tpu.memory_space<vmem>>, vector<8x128xf32>
    tpu.vector_store %arg8[%c0_38, %c0_39], %76 {strides = array<i32>} : memref<8x128xf32, #tpu.memory_space<vmem>>, vector<8x128xf32>,
    return
  }
  func.func @transform_0(%arg0: i32) -> (i32, i32) {
    %c0_i32 = arith.constant 0 : i32
    %c0_i32_0 = arith.constant 0 : i32
    %c0_i32_1 = arith.constant 0 : i32
    return %c0_i32, %c0_i32_0 : i32, i32
  }
  func.func @transform_1(%arg0: i32) -> (i32, i32) {
    %c0_i32 = arith.constant 0 : i32
    %c0_i32_0 = arith.constant 0 : i32
    %c0_i32_1 = arith.constant 0 : i32
    return %c0_i32, %c0_i32_0 : i32, i32
  }
  func.func @transform_2(%arg0: i32) -> (i32, i32) {
    %c0_i32 = arith.constant 0 : i32
    %c0_i32_0 = arith.constant 0 : i32
    %c0_i32_1 = arith.constant 0 : i32
    return %c0_i32, %c0_i32_0 : i32, i32
  }
  func.func @transform_3(%arg0: i32) -> (i32, i32) {
    %c0_i32 = arith.constant 0 : i32
    %c0_i32_0 = arith.constant 0 : i32
    %c0_i32_1 = arith.constant 0 : i32
    return %c0_i32, %c0_i32_0 : i32, i32
  }
  func.func @transform_4(%arg0: i32) -> (i32, i32) {
    %c0_i32 = arith.constant 0 : i32
    %c0_i32_0 = arith.constant 0 : i32
    %c0_i32_1 = arith.constant 0 : i32
    return %c0_i32, %c0_i32_0 : i32, i32
  }
  func.func @transform_5(%arg0: i32) -> (i32, i32) {
    %c0_i32 = arith.constant 0 : i32
    %c0_i32_0 = arith.constant 0 : i32
    return %c0_i32, %arg0 : i32, i32
  }
  func.func @transform_6(%arg0: i32) -> (i32, i32) {
    %c0_i32 = arith.constant 0 : i32
    %c0_i32_0 = arith.constant 0 : i32
    return %c0_i32, %arg0 : i32, i32
  }
  func.func @transform_7(%arg0: i32) -> (i32, i32) {
    %c0_i32 = arith.constant 0 : i32
    %c0_i32_0 = arith.constant 0 : i32
    return %c0_i32, %arg0 : i32, i32
  }
}

</mosaic_0001>

<bundles_post_ra>
// kernel: tpu_custom_call.1
= control target key start
LH: loop header
LB: loop body
LE: loop exit
PB: predicated region body
PF: predicated region fallthrough
CT: control target
= control target key end

     0   :  { %s1583_s0 = inlined_call_operand.hbm [shape: f32[8,64], index: 0, kind: input, shape index: {}]   ;;  %s1584_s1 = inlined_call_operand.hbm [shape: f32[64,64], index: 1, kind: input, shape index: {}]   ;;  %s1585_s2 = inlined_call_operand.vmem [shape: f32[2,64], index: 2, kind: input, shape index: {}]   ;;  %s1586_s3 = inlined_call_operand.hbm [shape: f32[64,64], index: 3, kind: input, shape index: {}]   ;;  %s1587_s4 = inlined_call_operand.hbm [shape: f32[2,64], index: 4, kind: input, shape index: {}]   ;;  %s1588_s5 = inlined_call_operand.hbm [shape: f32[64,256], index: 5, kind: input, shape index: {}]   ;;  %s1589_s6 = inlined_call_operand.vmem [shape: f32[2,256], index: 6, kind: input, shape index: {}]   ;;  %s1590_s7 = inlined_call_operand.hbm [shape: f32[8,256], index: 7, kind: output, shape index: {}]  }
   0x1   :  { %1598 = sst [smem:[#allocation17_spill]] %s1583_s0 }
   0x2   :  { %12 = vsyncpa [#allocation3], 0 }
   0x3   :  { %13 = vsyncpa [#allocation6], 0 }
   0x4   :  { %14 = vsyncpa [#allocation9], 0 }
   0x5   :  { %15 = vsyncpa [#allocation4], 0 }
   0x6   :  { %17 = vsyncpa [#allocation4 + $0x1], 0  ;;  %s1313_s24 = smov 0   ;;  %s1315_s25 = smov 0  }
   0x7   :  { %s1317_s26 = smov 0   ;;  %s1319_s27 = smov 0  }
   0x8 LB: > { %s1334_s28 = sadd.s32 4294967295, %s1260_s27   ;;  %s843_s29 = sadd.s32 4294967294, %s1260_s27   ;;  %s1260_s27 = sphi %s1319_s27, %s1625_s27   ;;  %s1256_s26 = sphi %s1317_s26, %s1624_s26   ;;  %s1252_s25 = sphi %s1315_s25, %s1623_s25   ;;  %s1248_s24 = sphi %s1313_s24, %s1622_s24  }
   0x9   : > { %s1338_s30 = sadd.s32 1, %s1260_s27   ;;  %s135_s8 = sadd.s32 1, %s1256_s26 }
   0xa   : > { %s132_s9 = ssub.s32 %s1260_s27, %s1338_s30  ;;  %p142_p0 = scmp.ne.s32.totalorder %s1256_s26, %s1252_s25 }
   0xb   : > { %p133_p1 = scmp.eq.s32.totalorder %s132_s9, 0  ;;  %p143_p2 = scmp.eq.s32.totalorder %s1260_s27, 0 }
   0xc   : > { %p148_p3 = scmp.ne.s32.totalorder %s1252_s25, %s1248_s24  ;;  %p1591_p4 = scmp.eq.s32.totalorder %s1334_s28, 0 }
   0xd   : > { %s1350_s10 = scalar_select %p133_p1, %s1256_s26, %s135_s8  }
   0xe   : > { %p1352_p5 = por %p143_p2, %p142_p0  ;;  %p1358_p6 = por %p1591_p4, %p148_p3 }
   0xf   : > { %p198_p7 = scmp.eq.s32.totalorder %s1334_s28, 1  ;;  %p204_p8 = scmp.eq.s32.totalorder %s843_s29, 1 }
  0x10   : > { %s1600_s12 = scalar_select %p1358_p6, 1, 0 }
  0x11   : > { %p844_p9 = scmp.ge.s32.totalorder %s1260_s27, 1  ;;  %p211_p10 = scmp.lt.s32.totalorder %s1260_s27, 3 }
  0x12   : > { %p1365_p11 = por %p198_p7, %p142_p0  ;;  %p1369_p12 = por %p204_p8, %p148_p3 }
  0x13   : > { %p1373_p13 = pnand %p844_p9, %p211_p10  ;;  %s1262_s16 = smov [#allocation2]  }
  0x14   : > { %s1601_s13 = scalar_select %p1365_p11, 1, 0 }
  0x15   : > { %s1602_s14 = scalar_select %p1369_p12, 1, 0 }
  0x16   : > { %s1603_s15 = scalar_select %p1373_p13, 1, 0 }
  0x17   : > { %p974_p2 = pneg %p1373_p13  ;;  %s224_s17 = sshll.u32 %s1262_s16, 4  ;;  %s225_s17 = int_to_ptr.vmem [resolvable:$true] %s224_s17 }
  0x18   : > { %p999_p4 = scmp.lt.s32.totalorder %s1260_s27, 2  ;;  %p1604_p0 = scmp.eq.s32.totalorder %s1334_s28, 0 }
  0x19   : > { %s1263_s20 = smov [#allocation5]   ;;  %s1063_s22 = scalar_lea.vmem %s225_s17, 128 }
  0x1a   : > { %p1383_p7 = pnand %p974_p2, %p1604_p0  ;;  %p1389_p3 = pnand %p999_p4, %p1352_p5 }
  0x1b   : > { %s234_s21 = sshll.u32 %s1263_s20, 4  ;;  %p1064_p9 = scmp.ne.s32.totalorder %s225_s17, %s1063_s22  ;;  %s235_s21 = int_to_ptr.vmem [resolvable:$true] %s234_s21 }
  0x1c   : > { %s1606_s19 = scalar_select %p1389_p3, 1, 0 }
  0x1d   : > { %p1054_p8 = pneg %p1383_p7  ;;  %p1071_p0 = scmp.lt.s32.totalorder %s225_s17, %s225_s17 }
  0x1e   : > { %p1072_p1 = scmp.lt.s32.totalorder %s1063_s22, %s1063_s22 }
  0x1f   : > { %p1066_p10 = pnand %p1064_p9, %p1054_p8 }
  0x20   : > { %p1073_p12 = por %p1072_p1, %p1071_p0 }
  0x21   : > { %p1067_p2 = pneg %p1066_p10 }
  0x23   : > { %p1074_p11 = pnand %p1073_p12, %p1067_p2 }
  0x25   : > { %1077 = shalt.err (!%p1074_p11)
}
  0x26   : > { %s1607_s0 = sld [smem:[#allocation17_spill]]  ;;  %s1089_s8 = scalar_lea.vmem %s235_s21, 1024 }
  0x27   : > { %p1090_p4 = scmp.ne.s32.totalorder %s235_s21, %s1089_s8  ;;  %p1097_p9 = scmp.lt.s32.totalorder %s235_s21, %s235_s21 }
  0x28   : > { %p1098_p10 = scmp.lt.s32.totalorder %s1089_s8, %s1089_s8 }
  0x29   : > { %p1092_p5 = pnand %p1090_p4, %p1054_p8 }
  0x2a   : > { %p1099_p13 = por %p1098_p10, %p1097_p9 }
  0x2b   : > { %p1093_p6 = pneg %p1092_p5 }
  0x2c   : > { %977 = dma.hbm_to_vmem [thread:$0]  (!%p1383_p7), %s1607_s0, 128, %s225_s17, [#allocation3]  }
  0x2d   : > { %p1100_p3 = pnand %p1099_p13, %p1093_p6 }
  0x2f   : > { %1103 = shalt.err (!%p1100_p3)
}
  0x30   : > { %s1596_s9 = smov 128   ;;  %s1597_s11 = smov 8  }
  0x31   : > { %980 = dma.hbm_to_vmem [thread:$0]  (!%p1383_p7), %s1584_s1, 1024, %s235_s21, [#allocation6], %s1596_s9, %s1596_s9, %s1597_s11  }
  0x32   : > { %s1266_s20 = smov [#allocation7]   ;;  %s1267_s23 = smov [#allocation8]  }
  0x33   : > { %s250_s22 = sshll.u32 %s1266_s20, 4  ;;  %s264_s29 = sshll.u32 %s1267_s23, 4  ;;  %s251_s22 = int_to_ptr.vmem [resolvable:$true] %s250_s22  ;;  %s265_s29 = int_to_ptr.vmem [resolvable:$true] %s264_s29 }
  0x34   : > { %s1115_s8 = scalar_lea.vmem %s251_s22, 1024  ;;  %p1123_p13 = scmp.lt.s32.totalorder %s251_s22, %s251_s22 }
  0x35   : > { %p1116_p6 = scmp.ne.s32.totalorder %s251_s22, %s1115_s8  ;;  %p1124_p1 = scmp.lt.s32.totalorder %s1115_s8, %s1115_s8 }
  0x37   : > { %p1118_p11 = pnand %p1116_p6, %p1054_p8  ;;  %p1125_p3 = por %p1124_p1, %p1123_p13 }
  0x39   : > { %p1119_p12 = pneg %p1118_p11 }
  0x3b   : > { %p1126_p2 = pnand %p1125_p3, %p1119_p12 }
  0x3d   : > { %1129 = shalt.err (!%p1126_p2)
}
  0x3e   : > { %983 = dma.hbm_to_vmem [thread:$0]  (!%p1383_p7), %s1586_s3, 1024, %s251_s22, [#allocation6], %s1596_s9, %s1596_s9, %s1597_s11  }
  0x3f   : > { %s275_s17 = sand.u32 1, %s1260_s27   ;;  %s1141_s20 = scalar_lea.vmem %s265_s29, 32 }
  0x40   : > { %p1142_p0 = scmp.ne.s32.totalorder %s265_s29, %s1141_s20  ;;  %p1149_p9 = scmp.lt.s32.totalorder %s265_s29, %s265_s29 }
  0x41   : > { %p1150_p10 = scmp.lt.s32.totalorder %s1141_s20, %s1141_s20 }
  0x42   : > { %p1144_p4 = pnand %p1142_p0, %p1054_p8 }
  0x43   : > { %p1151_p6 = por %p1150_p10, %p1149_p9 }
  0x44   : > { %p1145_p5 = pneg %p1144_p4 }
  0x46   : > { %p1152_p11 = pnand %p1151_p6, %p1145_p5 }
  0x48   : > { %1155 = shalt.err (!%p1152_p11)
}
  0x49   : > { %986 = dma.hbm_to_vmem [thread:$0]  (!%p1383_p7), %s1587_s4, 32, %s265_s29, [#allocation9]  }
  0x4a   : > { %s277_s22 = sand.u32 1, %s1256_s26   ;;  %s851_s16 = sshll.u32 %s1260_s27, 7 }
  0x4b   : > { %s850_s21 = sshll.u32 %s277_s22, 6  ;;  %s1439_s0 = scalar_lea.hbm %s1588_s5, %s851_s16 }
  0x4c   : > { %s279_s20 = scalar_lea.vmem [#allocation10], %s850_s21  ;;  %s1443_s23 = scalar_lea.sflag [#allocation3], %s275_s17 }
  0x4d   : > { %s285_s18 = sshll.u32 %s279_s20, 4  ;;  %s1156_s8 = scalar_lea.hbm %s1439_s0, 1024  ;;  %s1441_s18 = int_to_ptr.vmem [resolvable:$true] %s285_s18 }
  0x4e   : > { %p1157_p8 = scmp.ne.s32.totalorder %s1439_s0, %s1156_s8  ;;  %p1608_p7 = scmp.ne.s32.totalorder %s1606_s19, 0 }
  0x4f   : > { %s1161_s9 = scalar_lea.hbm %s1588_s5, 2048  ;;  %p1162_p3 = scmp.lt.s32.totalorder %s1439_s0, %s1588_s5 }
  0x50   : > { %p1158_p12 = pneg %p1608_p7  ;;  %p1163_p2 = scmp.lt.s32.totalorder %s1161_s9, %s1156_s8 }
  0x52   : > { %p1159_p13 = pnand %p1158_p12, %p1157_p8  ;;  %p1164_p0 = por %p1163_p2, %p1162_p3 }
  0x54   : > { %p1160_p1 = pneg %p1159_p13 }
  0x56   : > { %p1165_p4 = pnand %p1164_p0, %p1160_p1 }
  0x58   : > { %1168 = shalt.err (!%p1165_p4)
}
  0x59   : > { %s1169_s17 = scalar_lea.vmem %s1441_s18, 1024  ;;  %s1268_s21 = smov [#allocation10]  }
  0x5a   : > { %p1170_p5 = scmp.ne.s32.totalorder %s1441_s18, %s1169_s17  ;;  %s1174_s20 = sshll.u32 %s1268_s21, 4  ;;  %s1175_s20 = int_to_ptr.vmem [resolvable:$false] %s1174_s20 }
  0x5b   : > { %s1176_s29 = scalar_lea.vmem %s1175_s20, 2048  ;;  %p1177_p6 = scmp.lt.s32.totalorder %s1441_s18, %s1175_s20 }
  0x5c   : > { %p1172_p9 = pnand %p1170_p5, %p1158_p12  ;;  %p1178_p11 = scmp.lt.s32.totalorder %s1176_s29, %s1169_s17 }
  0x5e   : > { %p1173_p10 = pneg %p1172_p9  ;;  %p1179_p8 = por %p1178_p11, %p1177_p6 }
  0x60   : > { %p1180_p13 = pnand %p1179_p8, %p1173_p10 }
  0x62   : > { %1183 = shalt.err (!%p1180_p13)
}
  0x63   : > { %s1269_s8 = smov 256   ;;  %s1609_s22 = smov 8  }
  0x64   : > { %s1610_s9 = smov 128   ;;  %p1611_p12 = scmp.ne.s32.totalorder %s1603_s15, 0 }
  0x65   : > { %990 = dma.hbm_to_vmem [thread:$0]  (!%p1608_p7), %s1439_s0, 1024, %s1441_s18, %s1443_s23, %s1269_s8, %s1610_s9, %s1609_s22  }
  0x66   : > { %304 = sbr.rel (%p1611_p12) target bundleno = 658 (0x292), region = 48  ;;  %p1612_p1 = scmp.eq.s32.totalorder (!%p1611_p12), %s1334_s28, 0 }
  0x6b   : > { %1227 = dma.done.wait (%p1612_p1), [#allocation3], 128   ;;  %p1613_p3 = pmov %p1612_p1 }
  0x6c   : > { %p1614_p2 = pmov %p1612_p1 }
  0x6d   : > { %1229 = vsyncadd (%p1613_p3), [#allocation3], 4294967168 }
  0x6e   : > { %1231 = dma.done.wait (%p1614_p2), [#allocation6], 2048   ;;  %p1615_p0 = pmov %p1612_p1 }
  0x70   : > { %1233 = vsyncadd (%p1615_p0), [#allocation6], 4294965248  ;;  %p1616_p4 = pmov %p1615_p0 }
  0x71   : > { %p1617_p7 = pmov %p1615_p0 }
  0x72   : > { %1235 = dma.done.wait (%p1616_p4), [#allocation9], 32  }
  0x73   : > { %1237 = vsyncadd (%p1617_p7), [#allocation9], 4294967264  ;;  %s322_s0 = sand.u32 1, %s1334_s28   ;;  %s1482_s15 = sand.u32 1, %s1252_s25  }
  0x74   : > { %s857_s19 = sshll.u32 %s1482_s15, 6  ;;  %s323_s18 = scalar_lea.sflag [#allocation3], %s322_s0 }
  0x75   : > { %s1485_s23 = scalar_lea.vmem [#allocation10], %s857_s19  ;;  %p1618_p5 = scmp.ne.s32.totalorder %s1600_s12, 0 }
  0x77   : > { %1239 = dma.done.wait (%p1618_p5), %s323_s18, 1024  }
  0x78   : > { %1241 = vsyncadd (%p1618_p5), %s323_s18, 4294966272  ;;  %v1270_v0 = vmov 0.0   ;;  %vm1271_vm0 = vmmov 0   ;;  %v373_v1 = vld [vmem:[#allocation5 + $0x38] sm:$0xff]  ;;  %v372_v3 = vld [vmem:[#allocation5 + $0x30] sm:$0xff]  ;;  %vm374_vm1 = vcmask 523264  }
  0x79   : > { %897 = vmatprep.subr.mxu0 %v1270_v0  ;;  %916 = vmatprep.subr.mxu1 %v1270_v0  ;;  %v489_v2 = vld [vmem:[#allocation7 + $0x38] sm:$0xff]  ;;  %v488_v4 = vld [vmem:[#allocation7 + $0x30] sm:$0xff]  ;;  %v371_v5 = vld [vmem:[#allocation5 + $0x28] sm:$0xff]  ;;  %p361_p9 = scmp.lt.s32.totalorder %s1334_s28, 1  ;;  %s858_s9 = sshll.u32 %s1482_s15, 3 }
  0x7a   : > { %913 = vmatprep.mubr.msk.f32.mxu0 %vm1271_vm0, %v1270_v0  ;;  %932 = vmatprep.mubr.msk.f32.mxu1 %vm1271_vm0, %v1270_v0  ;;  %v487_v6 = vld [vmem:[#allocation7 + $0x28] sm:$0xff]  ;;  %v370_v7 = vld [vmem:[#allocation5 + $0x20] sm:$0xff]  ;;  %v369_v9 = vld [vmem:[#allocation5 + $0x18] sm:$0xff]  ;;  %s867_s0 = sshll.u32 %s1334_s28, 7  ;;  %s360_s19 = scalar_lea.vmem [#allocation11], %s858_s9 }
  0x7b   : > { %898 = vmatpush3.msra.mxu0 %v373_v1  ;;  %917 = vmatpush3.msra.mxu1 %v489_v2  ;;  %v486_v8 = vld [vmem:[#allocation7 + $0x20] sm:$0xff]  ;;  %v485_v10 = vld [vmem:[#allocation7 + $0x18] sm:$0xff]  ;;  %v368_v11 = vld [vmem:[#allocation5 + $0x10] sm:$0xff]  ;;  %s362_s21 = scalar_select %p361_p9, %s1334_s28, 1 }
  0x7c   : > { %899 = vmatprep.subr.mxu0 %v1270_v0  ;;  %918 = vmatprep.subr.mxu1 %v1270_v0  ;;  %v484_v12 = vld [vmem:[#allocation7 + $0x10] sm:$0xff]  ;;  %v367_v13 = vld [vmem:[#allocation5 + $0x8] sm:$0xff]  ;;  %v366_v15 = vld [vmem:[#allocation5] sm:$0xff]  ;;  %s723_s18 = sshll.u32 %s360_s19, 4  ;;  %s721_s11 = scalar_lea.hbm %s1590_s7, %s867_s0  ;;  %s724_s18 = int_to_ptr.vmem [resolvable:$true] %s723_s18 }
  0x7d   : > { %900 = vmatpush3.msra.mxu0 %v372_v3  ;;  %919 = vmatpush3.msra.mxu1 %v488_v4  ;;  %v483_v14 = vld [vmem:[#allocation7 + $0x8] sm:$0xff]  ;;  %v482_v16 = vld [vmem:[#allocation7] sm:$0xff]  ;;  %v365_v17 = vld [vmem:[#allocation2] sm:$0xff]  ;;  %v471_v4 = vlaneseq  ;;  %s859_s20 = sshll.u32 %s362_s21, 1  ;;  %s710_s16 = scalar_lea.sflag [#allocation4], %s1482_s15 }
  0x7e   : > { %901 = vmatprep.subr.mxu0 %v1270_v0  ;;  %920 = vmatprep.subr.mxu1 %v1270_v0  ;;  %v602_v18 = vld [vmem:[%s1485_s23 + $0x38] sm:$0xff]  ;;  %v601_v19 = vld [vmem:[%s1485_s23 + $0x30] sm:$0xff]  ;;  %v600_v20 = vld [vmem:[%s1485_s23 + $0x28] sm:$0xff]  ;;  %s364_s22 = scalar_lea.vmem %s1589_s6, %s859_s20  ;;  %s1184_s17 = scalar_lea.vmem %s724_s18, 128 }
  0x7f   : > { %902 = vmatpush3.msra.mxu0 %v371_v5  ;;  %921 = vmatpush3.msra.mxu1 %v487_v6  ;;  %v599_v21 = vld [vmem:[%s1485_s23 + $0x20] sm:$0xff]  ;;  %v598_v22 = vld [vmem:[%s1485_s23 + $0x18] sm:$0xff]  ;;  %v597_v23 = vld [vmem:[%s1485_s23 + $0x10] sm:$0xff]  ;;  %v472_v5 = vshrl.u32 %v471_v4, 7  ;;  %p1185_p10 = scmp.ne.s32.totalorder %s724_s18, %s1184_s17  ;;  %p1619_p6 = scmp.ne.s32.totalorder %s1601_s13, 0 }
  0x80   : > { %903 = vmatprep.subr.mxu0 %v1270_v0  ;;  %922 = vmatprep.subr.mxu1 %v1270_v0  ;;  %v596_v24 = vld [vmem:[%s1485_s23 + $0x8] sm:$0xff]  ;;  %v595_v25 = vld [vmem:[%s1485_s23] sm:$0xff]  ;;  %v448_v6 = vld [vmem:[%s1585_s2] sm:$0x1]  ;;  %s1272_s21 = smov [#allocation11]  }
  0x81   : > { %904 = vmatpush3.msra.mxu0 %v370_v7  ;;  %923 = vmatpush3.msra.mxu1 %v486_v8  ;;  %v473_v7 = vsub.s32 0, %v472_v5  ;;  %v560_v8 = vld [vmem:[#allocation8] sm:$0x1]  ;;  %p1186_p11 = pnand %p1185_p10, %p1619_p6  ;;  %s1188_s20 = sshll.u32 %s1272_s21, 4  ;;  %s1189_s20 = int_to_ptr.vmem [resolvable:$false] %s1188_s20 }
  0x82   : > { %905 = vmatprep.subr.mxu0 %v1270_v0  ;;  %924 = vmatprep.subr.mxu1 %v1270_v0  ;;  %s1190_s28 = scalar_lea.vmem %s1189_s20, 256  ;;  %p1191_p13 = scmp.lt.s32.totalorder %s724_s18, %s1189_s20 }
  0x83   : > { %906 = vmatpush3.msra.mxu0 %v369_v9  ;;  %925 = vmatpush3.msra.mxu1 %v485_v10  ;;  %p1187_p8 = pneg %p1186_p11  ;;  %p1192_p12 = scmp.lt.s32.totalorder %s1190_s28, %s1184_s17 }
  0x84   : > { %907 = vmatprep.subr.mxu0 %v1270_v0  ;;  %926 = vmatprep.subr.mxu1 %v1270_v0 }
  0x85   : > { %908 = vmatpush3.msra.mxu0 %v368_v11  ;;  %927 = vmatpush3.msra.mxu1 %v484_v12  ;;  %p1193_p1 = por %p1192_p12, %p1191_p13 }
  0x86   : > { %909 = vmatprep.subr.mxu0 %v1270_v0  ;;  %928 = vmatprep.subr.mxu1 %v1270_v0 }
  0x87   : > { %910 = vmatpush3.msra.mxu0 %v367_v13  ;;  %929 = vmatpush3.msra.mxu1 %v483_v14  ;;  %v861_v14 = vld [vmem:[%s1585_s2 + $0x1] ss:$0 sm:$0xff]  ;;  %p1194_p3 = pnand %p1193_p1, %p1187_p8 }
  0x88   : > { %911 = vmatprep.subr.mxu0 %v1270_v0  ;;  %930 = vmatprep.subr.mxu1 %v1270_v0 }
  0x89   : > { %912 = vmatpush3.msra.mxu0 %v366_v15  ;;  %931 = vmatpush3.msra.mxu1 %v482_v16 }
  0x8a   : > { %914 = vmatmul.mubr.msk.f32.vlgmr.msra.gmra.mxu0 %vm374_vm1, %v365_v17  ;;  %933 = vmatmul.mubr.msk.f32.vlgmr.msra.gmra.mxu1 %vm374_vm1, %v365_v17  ;;  %v863_v17 = vld [vmem:[#allocation8 + $0x1] ss:$0 sm:$0xff] }
  0x8b   : > { %935 = vmatprep.subr.mxu0 %v1270_v0  ;;  %951 = vmatprep.mubr.msk.f32.mxu0 %vm1271_vm0, %v1270_v0 }
  0x8c   : > { %936 = vmatpush3.msra.mxu0 %v602_v18 }
  0x8d   : > { %937 = vmatprep.subr.mxu0 %v1270_v0 }
  0x8e   : > { %938 = vmatpush3.msra.mxu0 %v601_v19 }
  0x8f   : > { %939 = vmatprep.subr.mxu0 %v1270_v0 }
  0x90   : > { %940 = vmatpush3.msra.mxu0 %v600_v20 }
  0x91   : > { %941 = vmatprep.subr.mxu0 %v1270_v0 }
  0x92   : > { %942 = vmatpush3.msra.mxu0 %v599_v21 }
  0x93   : > { %943 = vmatprep.subr.mxu0 %v1270_v0 }
  0x94   : > { %944 = vmatpush3.msra.mxu0 %v598_v22 }
  0x95   : > { %945 = vmatprep.subr.mxu0 %v1270_v0 }
  0x96   : > { %946 = vmatpush3.msra.mxu0 %v597_v23 }
  0x97   : > { %947 = vmatprep.subr.mxu0 %v1270_v0 }
  0x98   : > { %948 = vmatpush3.msra.mxu0 %v596_v24 }
  0x99   : > { %949 = vmatprep.subr.mxu0 %v1270_v0 }
  0x9a   : > { %950 = vmatpush3.msra.mxu0 %v595_v25 }
 0x14a   : > { %v444_v26 = vpop.f32.mrf.mxu0  ;;  %v556_v27 = vpop.f32.mrf.mxu1 }
 0x14b   : > { %v450_v28 = vsel %vm374_vm1, %v444_v26, 0.0  ;;  %v562_v29 = vsel %vm374_vm1, %v556_v27, 0.0 }
 0x14c   : > { %v451_v30 = vrot.slane %v450_v28, 4  ;;  %v563_v31 = vrot.slane %v562_v29, 4  ;;  %v915_v32 = vpop.f32.mrf.mxu0  ;;  %v934_v33 = vpop.f32.mrf.mxu1 }
 0x14e   : > { %v452_v34 = vadd.f32 %v451_v30, %v450_v28  ;;  %v564_v35 = vadd.f32 %v563_v31, %v562_v29 }
 0x150   : > { %v453_v36 = vrot.slane %v452_v34, 2  ;;  %v565_v37 = vrot.slane %v564_v35, 2 }
 0x152   : > { %v454_v38 = vadd.f32 %v453_v36, %v452_v34  ;;  %v566_v39 = vadd.f32 %v565_v37, %v564_v35 }
 0x154   : > { %v455_v40 = vrot.slane %v454_v38, 1  ;;  %v567_v41 = vrot.slane %v566_v39, 1 }
 0x156   : > { %v456_v42 = vadd.f32 %v455_v40, %v454_v38  ;;  %v568_v43 = vadd.f32 %v567_v41, %v566_v39 }
 0x158   : > { %v457_v44 = vmul.f32 0.125, %v456_v42  ;;  %v569_v45 = vmul.f32 0.125, %v568_v43  ;;  %v676_v43 = vld [vmem:[%s364_s22] sm:$0x1] }
 0x15a   : > { %v458_v46 = vsub.f32 %v444_v26, %v457_v44  ;;  %v570_v47 = vsub.f32 %v556_v27, %v569_v45 }
 0x15c   : > { %v459_v48 = vmul.f32 %v458_v46, %v458_v46  ;;  %v571_v49 = vmul.f32 %v570_v47, %v570_v47 }
 0x15e   : > { %v460_v50 = vsel %vm374_vm1, %v459_v48, 0.0  ;;  %v572_v51 = vsel %vm374_vm1, %v571_v49, 0.0 }
 0x15f   : > { %v461_v52 = vrot.slane %v460_v50, 4  ;;  %v573_v53 = vrot.slane %v572_v51, 4 }
 0x161   : > { %v462_v54 = vadd.f32 %v461_v52, %v460_v50  ;;  %v574_v55 = vadd.f32 %v573_v53, %v572_v51 }
 0x163   : > { %v463_v56 = vrot.slane %v462_v54, 2  ;;  %v575_v57 = vrot.slane %v574_v55, 2 }
 0x165   : > { %v464_v58 = vadd.f32 %v463_v56, %v462_v54  ;;  %v576_v59 = vadd.f32 %v575_v57, %v574_v55 }
 0x167   : > { %v465_v60 = vrot.slane %v464_v58, 1  ;;  %v577_v61 = vrot.slane %v576_v59, 1 }
 0x169   : > { %v466_v62 = vadd.f32 %v465_v60, %v464_v58  ;;  %v578_v63 = vadd.f32 %v577_v61, %v576_v59 }
 0x16b   : > { %v467_v0 = vmul.f32 0.125, %v466_v62  ;;  %v579_v1 = vmul.f32 0.125, %v578_v63 }
 0x16d   : > { %v468_v2 = vadd.f32 1e-05, %v467_v0  ;;  %v580_v3 = vadd.f32 1e-05, %v579_v1 }
 0x16f   : > { %1046 = vrsqrt.f32 %v468_v2 }
 0x170   : > { %1048 = vrsqrt.f32 %v580_v3 }
 0x17c   : > { %v1047_v9 = vpop.eup %1046 }
 0x17d   : > { %v1049_v10 = vpop.eup %1048  ;;  %v470_v11 = vmul.f32 %v1047_v9, %v448_v6 }
 0x17e   : > { %v582_v12 = vmul.f32 %v1049_v10, %v560_v8 }
 0x17f   : > { %v474_v13 = vrot.slane %v470_v11, %v473_v7 }
 0x180   : > { %v586_v15 = vrot.slane %v582_v12, %v473_v7 }
 0x181   : > { %v475_v16 = vmul.f32 %v474_v13, %v458_v46 }
 0x182   : > { %v587_v18 = vmul.f32 %v586_v15, %v570_v47  ;;  %v865_v47 = vld [vmem:[%s364_s22 + $0x1] ss:$0 sm:$0xff] }
 0x183   : > { %v480_v19 = vadd.f32 %v861_v14, %v475_v16 }
 0x184   : > { %v592_v20 = vadd.f32 %v863_v17, %v587_v18 }
 0x185   : > { %v481_v21 = vmax.f32 %v480_v19, 0.0 }
 0x186   : > { %v593_v22 = vmax.f32 %v592_v20, 0.0 }
 0x188   : > { %v594_v23 = vadd.f32 %v593_v22, %v481_v21 }
 0x18a   : > { %952 = vmatmul.mubr.msk.f32.vlgmr.msra.gmra.mxu0 %vm374_vm1, %v594_v23 }
 0x24a   : > { %v672_v24 = vpop.f32.mrf.mxu0 }
 0x24b   : > { %v678_v25 = vrot.slane %v672_v24, 4 }
 0x24c   : > { %v953_v26 = vpop.f32.mrf.mxu0 }
 0x24d   : > { %v679_v27 = vadd.f32 %v678_v25, %v672_v24 }
 0x24f   : > { %v680_v28 = vrot.slane %v679_v27, 2 }
 0x251   : > { %v681_v29 = vadd.f32 %v680_v28, %v679_v27 }
 0x253   : > { %v682_v30 = vrot.slane %v681_v29, 1 }
 0x255   : > { %v683_v31 = vadd.f32 %v682_v30, %v681_v29 }
 0x257   : > { %v684_v32 = vmul.f32 0.125, %v683_v31 }
 0x259   : > { %v685_v33 = vsub.f32 %v672_v24, %v684_v32 }
 0x25b   : > { %v686_v34 = vmul.f32 %v685_v33, %v685_v33 }
 0x25d   : > { %v687_v35 = vrot.slane %v686_v34, 4 }
 0x25f   : > { %v688_v36 = vadd.f32 %v687_v35, %v686_v34 }
 0x261   : > { %v689_v37 = vrot.slane %v688_v36, 2 }
 0x263   : > { %v690_v38 = vadd.f32 %v689_v37, %v688_v36 }
 0x265   : > { %v691_v39 = vrot.slane %v690_v38, 1 }
 0x267   : > { %v692_v40 = vadd.f32 %v691_v39, %v690_v38 }
 0x269   : > { %v693_v41 = vmul.f32 0.125, %v692_v40 }
 0x26b   : > { %v694_v42 = vadd.f32 1e-05, %v693_v41 }
 0x26d   : > { %1050 = vrsqrt.f32 %v694_v42 }
 0x27a   : > { %v1051_v44 = vpop.eup %1050 }
 0x27b   : > { %v696_v45 = vmul.f32 %v1051_v44, %v676_v43 }
 0x27d   : > { %v700_v46 = vrot.slane %v696_v45, %v473_v7 }
 0x27f   : > { %v701_v48 = vmul.f32 %v700_v46, %v685_v33 }
 0x281   : > { %v706_v49 = vadd.f32 %v865_v47, %v701_v48 }
 0x283   : > { %v707_v50 = vmax.f32 %v706_v49, 0.0 }
 0x285   : > { %708 = vst [vmem:[%s360_s19] sm:$0xff] %v707_v50 }
 0x286   : > { %1197 = shalt.err (!%p1194_p3)
}
 0x287   : > { %s1198_s29 = scalar_lea.hbm %s721_s11, 128  ;;  %s1202_s22 = scalar_lea.hbm %s1590_s7, 256 }
 0x288   : > { %p1199_p2 = scmp.ne.s32.totalorder %s721_s11, %s1198_s29  ;;  %p1203_p7 = scmp.lt.s32.totalorder %s721_s11, %s1590_s7 }
 0x289   : > { %p1204_p5 = scmp.lt.s32.totalorder %s1202_s22, %s1198_s29 }
 0x28a   : > { %p1200_p0 = pnand %p1199_p2, %p1619_p6 }
 0x28b   : > { %p1205_p9 = por %p1204_p5, %p1203_p7 }
 0x28c   : > { %p1201_p4 = pneg %p1200_p0 }
 0x28e   : > { %p1206_p10 = pnand %p1205_p9, %p1201_p4 }
 0x290   : > { %1209 = shalt.err (!%p1206_p10)
}
 0x291   : > { %972 = dma.vmem_to_hbm [thread:$0]  (%p1619_p6), %s724_s18, 128, %s721_s11, %s710_s16  }
 0x292 PF: > { %s735_s19 = sand.u32 1, %s1248_s24   ;;  %p1620_p11 = scmp.ne.s32.totalorder %s1602_s14, 0 }
 0x293   : > { %p1621_p8 = scmp.ge.s32.totalorder %s1260_s27, 2  ;;  %s736_s23 = scalar_lea.sflag [#allocation4], %s735_s19 }
 0x295   : > { %p992_p13 = pnand %p1621_p8, %p1620_p11 }
 0x297   : > { %p993_p12 = pneg %p992_p13 }
 0x299   : > { %1243 = dma.done.wait (%p993_p12), %s736_s23, 128  }
 0x29a   : > { %1245 = vsyncadd (%p993_p12), %s736_s23, 4294967168  ;;  %p20_p1 = scmp.ge.s32.totalorder %s1338_s30, 4   ;;  %s1622_s24 = smov %s1252_s25 }
 0x29b   : > { %s1623_s25 = smov %s1256_s26  ;;  %s1624_s26 = smov %s1350_s10 }
 0x29c   : > { %s1625_s27 = smov %s1338_s30  ;;  %22 = sbr.rel (!%p20_p1) target bundleno = 8 (0x8), region = 111 }
 0x2a1   :  { %741 = vsyncpa [#allocation3], 1 }
 0x2a2   :  { %743 = vsyncpa [#allocation3 + $0x1], 1 }
 0x2a3   :  { %744 = vsyncpa [#allocation6], 1 }
 0x2a4   :  { %745 = vsyncpa [#allocation9], 1 }
 0x2a5   :  { %746 = vsyncpa [#allocation4], 1 }
 0x2a6   :  { %748 = vsyncpa [#allocation4 + $0x1], 1 }

</bundles_post_ra>
